<compile_context>
chip_gen: v7x
topology: tpu7x:2x2x1
jax: 0.10.0
libtpu: 0.0.40
codegen_flags: <defaults>
</compile_context>

<pallas_src>
import functools

import jax
import jax.numpy as jnp
from jax.experimental import pallas as pl
from jax.experimental.pallas import tpu as pltpu


def _round_up(x, m):
    return (x + m - 1) // m * m


def _cdiv(a, b):
    return -(-a // b)


def _global_perceptron_kernel(x_ref, w1_ref, b1_ref, w2_ref, b2_ref,
                              o_ref, acc_ref, *, inv_hw, hw, hw_tile,
                              mask_tail):
    # x_ref  : (n_tile, C, hw_tile)  one spatial slab of the input
    # w1_ref : (C, Ip)   b1_ref: (1, Ip)
    # w2_ref : (Ip, Cp)  b2_ref: (1, Cp)
    # o_ref  : (1, n_tile, Cp)       resident across the HW axis
    # acc_ref: (n_tile, C) f32 VMEM scratch, pooled-sum accumulator
    hw_step = pl.program_id(1)

    @pl.when(hw_step == 0)
    def _():
        acc_ref[...] = jnp.zeros_like(acc_ref)

    x = x_ref[...].astype(jnp.float32)                       # (n_tile, C, hw_tile)
    if mask_tail:
        # Ragged HW tail: zero out lanes beyond the true spatial extent so the
        # un-padded input can be streamed directly from HBM.
        lane = jax.lax.broadcasted_iota(jnp.int32, x.shape, 2)
        valid = (hw_step * hw_tile + lane) < hw
        x = jnp.where(valid, x, 0.0)
    # TODO(synk): on v7x one could defer this cross-lane reduce (accumulate a
    # (n_tile, C, 128) vreg sum and collapse only in the epilogue) if a bundle
    # dump ever shows the XLU not hidden under the DMA.
    acc_ref[...] += jnp.sum(x, axis=-1)                      # (n_tile, C)

    @pl.when(hw_step == pl.num_programs(1) - 1)
    def _():
        # adaptive_avg_pool2d to (1,1) == global mean over H*W.
        pooled = acc_ref[...] * inv_hw                       # (n_tile, C)
        # fc1 (1x1 conv) + ReLU
        h = jnp.dot(pooled, w1_ref[...], preferred_element_type=jnp.float32)
        h = jnp.maximum(h + b1_ref[...], 0.0)                # (n_tile, Ip)
        # fc2 (1x1 conv) + sigmoid
        y = jnp.dot(h, w2_ref[...], preferred_element_type=jnp.float32)
        y = jax.nn.sigmoid(y + b2_ref[...])                  # (n_tile, Cp)
        o_ref[0] = y.astype(o_ref.dtype)


def global_perceptron(x_nchw, w1, b1, w2, b2, *, block_target_bytes=8 << 20):
    """x_nchw: (N, C, H, W); w1: (C, I), b1: (I,), w2: (I, C), b2: (C,).

    Note: w1/w2 are the 1x1-conv weights pre-transposed to dense layout
    ((C, I) and (I, C)) relative to PyTorch's Conv2d (out, in, 1, 1).
    Returns (N, C, 1, 1), matching the PyTorch module output.
    """
    n, c, h, w = x_nchw.shape
    i = w1.shape[1]
    assert w1.shape == (c, i) and b1.shape == (i,), (w1.shape, b1.shape)
    assert w2.shape == (i, c) and b2.shape == (c,), (w2.shape, b2.shape)

    hw = h * w
    itemsize = jnp.dtype(x_nchw.dtype).itemsize
    sub = max(8, 32 // itemsize)                 # sublane multiple for dtype
    c_sub = _round_up(c, sub)                    # C is the sublane dim of x blocks
    hw_lane = max(128, _round_up(hw, 128))       # VMEM lane footprint of full hw

    # ---- tile sizing (true VMEM footprint, not raw bytes) ------------------
    row_bytes_full_hw = c_sub * hw_lane * itemsize
    if row_bytes_full_hw <= block_target_bytes:
        # The whole spatial extent of n_tile rows fits: one contiguous DMA per
        # block, no hw tiling, no tail mask.
        hw_tile = hw
        n_tile = max(1, min(n, block_target_bytes // row_bytes_full_hw))
        if n >= 2:
            # Keep >= 2 batch blocks so the "parallel" axis feeds both v7x TCs.
            n_tile = min(n_tile, _cdiv(n, 2))
    else:
        # Large hw: one batch row per block, balanced 128-multiple hw tiles so
        # tail padding stays < 128 lanes.
        # TODO(synk): add a C grid axis (with a full-C accumulator) for C in the
        # many thousands, where even (1, C, 128) blocks exceed the budget.
        n_tile = 1
        max_hw_tile = max(128, (block_target_bytes // (c_sub * itemsize)) // 128 * 128)
        n_chunks = _cdiv(hw, max_hw_tile)
        hw_tile = _round_up(_cdiv(hw, n_chunks), 128)

    n_blocks = _cdiv(n, n_tile)
    hw_blocks = _cdiv(hw, hw_tile)
    mask_tail = (hw % hw_tile) != 0

    # Channel dims padded to 128 -> lane-dense epilogue operands/stores.
    # Weights/biases are tiny, so this padding is negligible (the big input is
    # NOT padded or copied).
    c_pad = _round_up(c, 128)
    i_pad = _round_up(i, 128)
    w_itemsize = jnp.dtype(w1.dtype).itemsize

    x_flat = x_nchw.reshape(n, c, hw)            # contiguous reshape, no copy
    w1_p = jnp.pad(w1, ((0, 0), (0, i_pad - i)))
    b1_p = jnp.pad(b1, (0, i_pad - i)).reshape(1, i_pad)
    w2_p = jnp.pad(w2, ((0, i_pad - i), (0, c_pad - c)))
    b2_p = jnp.pad(b2, (0, c_pad - c)).reshape(1, c_pad)

    # ---- VMEM budget (double-buffered blocks + scratch) --------------------
    x_block_bytes = n_tile * c_sub * max(128, _round_up(hw_tile, 128)) * itemsize
    w_bytes = (c * i_pad + i_pad + i_pad * c_pad + c_pad) * w_itemsize
    out_block_bytes = _round_up(n_tile, sub) * c_pad * itemsize
    acc_bytes = _round_up(n_tile, 8) * _round_up(c, 128) * 4
    vmem_needed = 2 * (x_block_bytes + w_bytes + out_block_bytes) + acc_bytes + (2 << 20)
    vmem_limit = int(min(max(32 << 20, vmem_needed), 60 << 20))

    cost = pl.CostEstimate(
        flops=n * c * hw + 4 * n * c * i,
        transcendentals=n * c,                                   # sigmoid only
        bytes_accessed=(n * c * hw + n * c) * itemsize
        + (c * i + i + i * c + c) * w_itemsize,
    )

    kernel = functools.partial(
        _global_perceptron_kernel,
        inv_hw=1.0 / hw, hw=hw, hw_tile=hw_tile, mask_tail=mask_tail)

    out = pl.pallas_call(
        kernel,
        out_shape=jax.ShapeDtypeStruct((n_blocks, n_tile, c_pad), x_nchw.dtype),
        grid_spec=pltpu.PrefetchScalarGridSpec(
            num_scalar_prefetch=0,
            grid=(n_blocks, hw_blocks),
            in_specs=[
                pl.BlockSpec((n_tile, c, hw_tile), lambda ni, hi: (ni, 0, hi)),
                pl.BlockSpec((c, i_pad), lambda ni, hi: (0, 0)),
                pl.BlockSpec((1, i_pad), lambda ni, hi: (0, 0)),
                pl.BlockSpec((i_pad, c_pad), lambda ni, hi: (0, 0)),
                pl.BlockSpec((1, c_pad), lambda ni, hi: (0, 0)),
            ],
            out_specs=pl.BlockSpec((1, n_tile, c_pad), lambda ni, hi: (ni, 0, 0)),
            scratch_shapes=[pltpu.VMEM((n_tile, c), jnp.float32)],
        ),
        compiler_params=pltpu.CompilerParams(
            dimension_semantics=("parallel", "arbitrary"),
            vmem_limit_bytes=vmem_limit,
        ),
        cost_estimate=cost,
    )(x_flat, w1_p, b1_p, w2_p, b2_p)

    out = out.reshape(n_blocks * n_tile, c_pad)[:n, :c]
    return out.reshape(n, c, 1, 1)


def _reference(x_nchw, w1, b1, w2, b2):
    pooled = jnp.mean(x_nchw.astype(jnp.float32), axis=(2, 3))
    hh = jax.nn.relu(pooled @ w1 + b1)
    y = jax.nn.sigmoid(hh @ w2 + b2)
    n, c = y.shape
    return y.reshape(n, c, 1, 1)


if __name__ == "__main__":
    key = jax.random.PRNGKey(0)
    N, C, H, W = 2, 4, 16, 16          # input_channels = 4
    I = 8                              # internal_neurons = 8

    k_x, k_w1, k_b1, k_w2, k_b2 = jax.random.split(key, 5)
    x = jax.random.uniform(k_x, (N, C, H, W), dtype=jnp.float32)

    # fc1: Conv2d(C -> I, 1x1) weight (I, C, 1, 1) -> stored pre-transposed (C, I)
    w1 = jax.random.normal(k_w1, (C, I), dtype=jnp.float32) * 0.1
    b1 = jax.random.normal(k_b1, (I,), dtype=jnp.float32) * 0.1
    # fc2: Conv2d(I -> C, 1x1) weight (C, I, 1, 1) -> stored pre-transposed (I, C)
    w2 = jax.random.normal(k_w2, (I, C), dtype=jnp.float32) * 0.1
    b2 = jax.random.normal(k_b2, (C,), dtype=jnp.float32) * 0.1

    out = jax.block_until_ready(global_perceptron(x, w1, b1, w2, b2))
    ref = _reference(x, w1, b1, w2, b2)

    assert out.shape == (N, C, 1, 1), out.shape
    assert jnp.allclose(out, ref.astype(out.dtype), atol=1e-5, rtol=1e-5), (
        float(jnp.max(jnp.abs(out - ref))))

    print("KERNEL_OK")
</pallas_src>

<mosaic_0001>
module attributes {stable_mosaic.version = 11 : i64} {
  func.func @_global_perceptron_kernel(%arg0: i32, %arg1: i32, %arg2: memref<1x4x256xf32, #tpu.memory_space<vmem>>, %arg3: memref<4x128xf32, #tpu.memory_space<vmem>>, %arg4: memref<1x128xf32, #tpu.memory_space<vmem>>, %arg5: memref<128x128xf32, #tpu.memory_space<vmem>>, %arg6: memref<1x128xf32, #tpu.memory_space<vmem>>, %arg7: memref<1x1x128xf32, #tpu.memory_space<vmem>>, %arg8: memref<1x4xf32, #tpu.memory_space<vmem>>) attributes {dimension_semantics = [#tpu.dimension_semantics<parallel>, #tpu.dimension_semantics<arbitrary>], iteration_bounds = array<i64: 2, 1>, scalar_prefetch = 0 : i64, scratch_operands = 1 : i64, tpu.core_type = #tpu.core_type<tc>, window_params = [{transform_indices = @transform_0, window_bounds = array<i64: 1, 4, 256>}, {pipeline_mode = #tpu.pipeline_mode<synchronous>, transform_indices = @transform_1, window_bounds = array<i64: 4, 128>}, {pipeline_mode = #tpu.pipeline_mode<synchronous>, transform_indices = @transform_2, window_bounds = array<i64: 1, 128>}, {pipeline_mode = #tpu.pipeline_mode<synchronous>, transform_indices = @transform_3, window_bounds = array<i64: 128, 128>}, {pipeline_mode = #tpu.pipeline_mode<synchronous>, transform_indices = @transform_4, window_bounds = array<i64: 1, 128>}, {transform_indices = @transform_5, window_bounds = array<i64: 1, 1, 128>}]} {
    %c0_i32 = arith.constant 0 : i32
    %0 = arith.cmpi eq, %arg1, %c0_i32 : i32
    %1 = arith.extui %0 : i1 to i32
    %c0_i32_0 = arith.constant 0 : i32
    %2 = arith.cmpi ne, %1, %c0_i32_0 : i32
    scf.if %2 {
      %cst_9 = arith.constant 0.000000e+00 : f32
      %11 = vector.broadcast %cst_9 : f32 to vector<1x4xf32>
      %c0_10 = arith.constant 0 : index
      %c0_11 = arith.constant 0 : index
      %12 = vector.load %arg8[%c0_10, %c0_11] : memref<1x4xf32, #tpu.memory_space<vmem>>, vector<1x4xf32>
      tpu.vector_store %arg8[%c0_10, %c0_11], %11 {strides = array<i32>} : memref<1x4xf32, #tpu.memory_space<vmem>>, vector<1x4xf32>,
    } else {
    }
    %c0 = arith.constant 0 : index
    %c0_1 = arith.constant 0 : index
    %c0_2 = arith.constant 0 : index
    %3 = vector.load %arg2[%c0, %c0_1, %c0_2] : memref<1x4x256xf32, #tpu.memory_space<vmem>>, vector<1x4x256xf32>
    %c0_3 = arith.constant 0 : index
    %c0_4 = arith.constant 0 : index
    %4 = vector.load %arg8[%c0_3, %c0_4] : memref<1x4xf32, #tpu.memory_space<vmem>>, vector<1x4xf32>
    %cst = arith.constant dense<0.000000e+00> : vector<1x4xf32>
    %5 = vector.multi_reduction <add>, %3, %cst [2] : vector<1x4x256xf32> to vector<1x4xf32>
    %6 = arith.addf %4, %5 : vector<1x4xf32>
    %c0_5 = arith.constant 0 : index
    %c0_6 = arith.constant 0 : index
    %7 = vector.load %arg8[%c0_5, %c0_6] : memref<1x4xf32, #tpu.memory_space<vmem>>, vector<1x4xf32>
    tpu.vector_store %arg8[%c0_5, %c0_6], %6 {strides = array<i32>} : memref<1x4xf32, #tpu.memory_space<vmem>>, vector<1x4xf32>,
    %c0_i32_7 = arith.constant 0 : i32
    %8 = arith.cmpi eq, %arg1, %c0_i32_7 : i32
    %9 = arith.extui %8 : i1 to i32
    %c0_i32_8 = arith.constant 0 : i32
    %10 = arith.cmpi ne, %9, %c0_i32_8 : i32
    scf.if %10 {
      %c0_9 = arith.constant 0 : index
      %c0_10 = arith.constant 0 : index
      %11 = vector.load %arg8[%c0_9, %c0_10] : memref<1x4xf32, #tpu.memory_space<vmem>>, vector<1x4xf32>
      %cst_11 = arith.constant 3.906250e-03 : f32
      %12 = vector.broadcast %cst_11 : f32 to vector<1x4xf32>
      %13 = arith.mulf %11, %12 : vector<1x4xf32>
      %c0_12 = arith.constant 0 : index
      %c0_13 = arith.constant 0 : index
      %14 = vector.load %arg3[%c0_12, %c0_13] : memref<4x128xf32, #tpu.memory_space<vmem>>, vector<4x128xf32>
      %cst_14 = arith.constant dense<0.000000e+00> : vector<1x128xf32>
      %15 = tpu.matmul %13, %14, %cst_14 {dimension_numbers = #tpu.dot_dimension_numbers<[1], [0], [0], [1], [0, 0, 1, 1], [], []>} : vector<1x4xf32>, vector<4x128xf32>, vector<1x128xf32> -> vector<1x128xf32>
      %c0_15 = arith.constant 0 : index
      %c0_16 = arith.constant 0 : index
      %16 = vector.load %arg4[%c0_15, %c0_16] : memref<1x128xf32, #tpu.memory_space<vmem>>, vector<1x128xf32>
      %17 = arith.addf %15, %16 : vector<1x128xf32>
      %cst_17 = arith.constant 0.000000e+00 : f32
      %18 = vector.broadcast %cst_17 : f32 to vector<1x128xf32>
      %19 = arith.maximumf %17, %18 : vector<1x128xf32>
      %c0_18 = arith.constant 0 : index
      %c0_19 = arith.constant 0 : index
      %20 = vector.load %arg5[%c0_18, %c0_19] : memref<128x128xf32, #tpu.memory_space<vmem>>, vector<128x128xf32>
      %cst_20 = arith.constant dense<0.000000e+00> : vector<1x128xf32>
      %21 = tpu.matmul %19, %20, %cst_20 {dimension_numbers = #tpu.dot_dimension_numbers<[1], [0], [0], [1], [0, 0, 1, 1], [], []>} : vector<1x128xf32>, vector<128x128xf32>, vector<1x128xf32> -> vector<1x128xf32>
      %c0_21 = arith.constant 0 : index
      %c0_22 = arith.constant 0 : index
      %22 = vector.load %arg6[%c0_21, %c0_22] : memref<1x128xf32, #tpu.memory_space<vmem>>, vector<1x128xf32>
      %23 = arith.addf %21, %22 : vector<1x128xf32>
      %24 = arith.negf %23 : vector<1x128xf32>
      %25 = math.exp %24 : vector<1x128xf32>
      %cst_23 = arith.constant 1.000000e+00 : f32
      %26 = vector.broadcast %cst_23 : f32 to vector<1x128xf32>
      %27 = arith.addf %26, %25 : vector<1x128xf32>
      %28 = arith.divf %26, %27 : vector<1x128xf32>
      %c0_24 = arith.constant 0 : index
      %c0_25 = arith.constant 0 : index
      %c0_26 = arith.constant 0 : index
      %29 = vector.load %arg7[%c0_24, %c0_25, %c0_26] : memref<1x1x128xf32, #tpu.memory_space<vmem>>, vector<1x1x128xf32>
      %30 = vector.shape_cast %29 : vector<1x1x128xf32> to vector<1x128xf32>
      %31 = vector.shape_cast %28 : vector<1x128xf32> to vector<1x1x128xf32>
      tpu.vector_store %arg7[%c0_24, %c0_25, %c0_26], %31 {strides = array<i32>} : memref<1x1x128xf32, #tpu.memory_space<vmem>>, vector<1x1x128xf32>,
    } else {
    }
    return
  }
  func.func @transform_0(%arg0: i32, %arg1: i32) -> (i32, i32, i32) {
    %c0_i32 = arith.constant 0 : i32
    %c0_i32_0 = arith.constant 0 : i32
    return %arg0, %c0_i32, %arg1 : i32, i32, i32
  }
  func.func @transform_1(%arg0: i32, %arg1: i32) -> (i32, i32) {
    %c0_i32 = arith.constant 0 : i32
    %c0_i32_0 = arith.constant 0 : i32
    %c0_i32_1 = arith.constant 0 : i32
    return %c0_i32, %c0_i32_0 : i32, i32
  }
  func.func @transform_2(%arg0: i32, %arg1: i32) -> (i32, i32) {
    %c0_i32 = arith.constant 0 : i32
    %c0_i32_0 = arith.constant 0 : i32
    %c0_i32_1 = arith.constant 0 : i32
    return %c0_i32, %c0_i32_0 : i32, i32
  }
  func.func @transform_3(%arg0: i32, %arg1: i32) -> (i32, i32) {
    %c0_i32 = arith.constant 0 : i32
    %c0_i32_0 = arith.constant 0 : i32
    %c0_i32_1 = arith.constant 0 : i32
    return %c0_i32, %c0_i32_0 : i32, i32
  }
  func.func @transform_4(%arg0: i32, %arg1: i32) -> (i32, i32) {
    %c0_i32 = arith.constant 0 : i32
    %c0_i32_0 = arith.constant 0 : i32
    %c0_i32_1 = arith.constant 0 : i32
    return %c0_i32, %c0_i32_0 : i32, i32
  }
  func.func @transform_5(%arg0: i32, %arg1: i32) -> (i32, i32, i32) {
    %c0_i32 = arith.constant 0 : i32
    %c0_i32_0 = arith.constant 0 : i32
    %c0_i32_1 = arith.constant 0 : i32
    return %arg0, %c0_i32, %c0_i32_0 : i32, i32, i32
  }
}

</mosaic_0001>

<bundles_post_ra>
// kernel: tpu_custom_call.1
= control target key start
LH: loop header
LB: loop body
LE: loop exit
PB: predicated region body
PF: predicated region fallthrough
CT: control target
= control target key end

     0   :  { %10 = vsyncpa [#allocation4], 0  ;;  %s1340_s0 = inlined_call_operand.hbm [shape: f32[2,4,256], index: 0, kind: input, shape index: {}]   ;;  %s1341_s1 = inlined_call_operand.hbm [shape: f32[4,128], index: 1, kind: input, shape index: {}]   ;;  %s1342_s2 = inlined_call_operand.vmem [shape: f32[1,128], index: 2, kind: input, shape index: {}]   ;;  %s1343_s3 = inlined_call_operand.hbm [shape: f32[128,128], index: 3, kind: input, shape index: {}]   ;;  %s1344_s4 = inlined_call_operand.vmem [shape: f32[1,128], index: 4, kind: input, shape index: {}]   ;;  %s1345_s5 = inlined_call_operand.hbm [shape: f32[2,1,128], index: 5, kind: output, shape index: {}]  }
   0x1   :  { %12 = vsyncpa [#allocation4 + $0x1], 0 }
   0x2   :  { %13 = vsyncpa [#allocation7], 0 }
   0x3   :  { %14 = vsyncpa [#allocation5], 0 }
   0x4   :  { %16 = vsyncpa [#allocation5 + $0x1], 0  ;;  %s1071_s18 = smov 0   ;;  %s1073_s19 = smov 0  }
   0x5   :  { %s1075_s20 = smov 0   ;;  %s1077_s21 = smov 0  }
   0x6   :  { %s1079_s22 = smov 0   ;;  %s1081_s23 = smov 0  }
   0x7 LB: > { %s657_s24 = sadd.s32 4294967295, %s1028_s23   ;;  %s658_s25 = sadd.s32 4294967294, %s1028_s23   ;;  %s1028_s23 = sphi %s1081_s23, %s22_s23   ;;  %s1024_s22 = sphi %s1079_s22, %s1368_s22   ;;  %s1020_s21 = sphi %s1077_s21, %s1367_s21   ;;  %s1016_s20 = sphi %s1075_s20, %s1366_s20   ;;  %s1012_s19 = sphi %s1073_s19, %s1365_s19   ;;  %s1008_s18 = sphi %s1071_s18, %s1364_s18  }
   0x8   : > { %p56_p0 = scmp.ne.s32.totalorder %s1012_s19, %s1008_s18  ;;  %p1105_p1 = scmp.eq.s32.totalorder %s657_s24, 0 }
   0x9   : > { %p1109_p2 = scmp.eq.s32.totalorder %s657_s24, 1  ;;  %p170_p3 = scmp.eq.s32.totalorder %s658_s25, 1 }
   0xa   : > { %s1350_s26 = scalar_select %p1105_p1, 1, 0 }
   0xb   : > { %s1351_s27 = scalar_select %p1109_p2, 1, 0 }
   0xc   : > { %p1115_p4 = por %p1105_p1, %p56_p0  ;;  %p659_p5 = scmp.ge.s32.totalorder %s1028_s23, 1 }
   0xd   : > { %p1120_p6 = por %p170_p3, %p56_p0  ;;  %p177_p7 = scmp.lt.s32.totalorder %s1028_s23, 3 }
   0xe   : > { %s1352_s28 = scalar_select %p1115_p4, 1, 0 }
   0xf   : > { %s1353_s29 = scalar_select %p1120_p6, 1, 0 }
  0x10   : > { %p1125_p8 = pnand %p659_p5, %p177_p7  ;;  %s1030_s6 = smov [#allocation6]  }
  0x11   : > { %s190_s7 = sshll.u32 %s1030_s6, 4  ;;  %s1031_s8 = smov [#allocation8]   ;;  %s191_s7 = int_to_ptr.vmem [resolvable:$true] %s190_s7 }
  0x12   : > { %s1354_s30 = scalar_select %p1125_p8, 1, 0 }
  0x13   : > { %p772_p10 = pneg %p1125_p8  ;;  %s203_s9 = sshll.u32 %s1031_s8, 4  ;;  %s1138_s9 = int_to_ptr.vmem [resolvable:$true] %s203_s9 }
  0x14   : > { %s856_s13 = scalar_lea.hbm %s1341_s1, 64 }
  0x15   : > { %p1134_p11 = pnand %p772_p10, %p1105_p1  ;;  %p857_p12 = scmp.ne.s32.totalorder %s1341_s1, %s856_s13 }
  0x16   : > { %p863_p5 = scmp.lt.u32.totalorder %s856_s13, %s1341_s1 }
  0x17   : > { %p858_p13 = pneg %p1134_p11 }
  0x19   : > { %p859_p0 = pnand %p858_p13, %p857_p12 }
  0x1b   : > { %p860_p3 = pneg %p859_p0 }
  0x1d   : > { %p865_p7 = pnand %p863_p5, %p860_p3 }
  0x1f   : > { %868 = shalt.err (!%p865_p7)
}
  0x20   : > { %s869_s24 = scalar_lea.vmem %s191_s7, 64  ;;  %p877_p1 = scmp.lt.s32.totalorder %s191_s7, %s191_s7 }
  0x21   : > { %p870_p10 = scmp.ne.s32.totalorder %s191_s7, %s869_s24  ;;  %p878_p4 = scmp.lt.s32.totalorder %s869_s24, %s869_s24 }
  0x23   : > { %p872_p9 = pnand %p870_p10, %p858_p13  ;;  %p879_p8 = por %p878_p4, %p877_p1 }
  0x25   : > { %p873_p6 = pneg %p872_p9 }
  0x27   : > { %p880_p2 = pnand %p879_p8, %p873_p6 }
  0x29   : > { %883 = shalt.err (!%p880_p2)
}
  0x2a   : > { %775 = dma.hbm_to_vmem [thread:$0]  (!%p1134_p11), %s1341_s1, 64, %s191_s7, [#allocation7]  }
  0x2b   : > { %s884_s12 = scalar_lea.hbm %s1343_s3, 2048 }
  0x2c   : > { %p885_p9 = scmp.ne.s32.totalorder %s1343_s3, %s884_s12  ;;  %p891_p2 = scmp.lt.u32.totalorder %s884_s12, %s1343_s3 }
  0x2e   : > { %p887_p1 = pnand %p885_p9, %p858_p13 }
  0x30   : > { %p888_p4 = pneg %p887_p1 }
  0x32   : > { %p893_p6 = pnand %p891_p2, %p888_p4 }
  0x34   : > { %896 = shalt.err (!%p893_p6)
}
  0x35   : > { %s897_s7 = scalar_lea.vmem %s1138_s9, 2048  ;;  %p905_p3 = scmp.lt.s32.totalorder %s1138_s9, %s1138_s9 }
  0x36   : > { %p898_p8 = scmp.ne.s32.totalorder %s1138_s9, %s897_s7  ;;  %p906_p5 = scmp.lt.s32.totalorder %s897_s7, %s897_s7 }
  0x38   : > { %p900_p12 = pnand %p898_p8, %p858_p13  ;;  %p907_p7 = por %p906_p5, %p905_p3 }
  0x3a   : > { %p901_p0 = pneg %p900_p12 }
  0x3c   : > { %p908_p10 = pnand %p907_p7, %p901_p0 }
  0x3e   : > { %911 = shalt.err (!%p908_p10)
}
  0x3f   : > { %s1032_s17 = smov 128   ;;  %s1033_s24 = smov 8  }
  0x40   : > { %778 = dma.hbm_to_vmem [thread:$0]  (!%p1134_p11), %s1343_s3, 2048, %s1138_s9, [#allocation7], %s1032_s17, %s1032_s17, %s1033_s24  }
  0x41   : > { %s34_s8 = sadd.s32 1, %s1024_s22  ;;  %s43_s11 = sadd.s32 1, %s1016_s20 }
  0x42   : > { %p36_p13 = scmp.ge.s32.totalorder %s34_s8, 2  ;;  %p50_p9 = scmp.ne.s32.totalorder %s1016_s20, %s1012_s19 }
  0x43   : > { %p51_p1 = scmp.eq.s32.totalorder %s1028_s23, 0  ;;  %p789_p4 = scmp.lt.s32.totalorder %s1028_s23, 2 }
  0x44   : > { %s1370_s8 = smov (%p36_p13, %s34_s8), 0  ;;  %p1356_p6 = scmp.ne.s32.totalorder %s1351_s27, 0 }
  0x45   : > { %p52_p2 = por %p51_p1, %p50_p9  ;;  %s38_s10 = ssub.s32 %s1024_s22, %s1370_s8 }
  0x46   : > { %p1197_p8 = por %p1356_p6, %p50_p9  ;;  %s220_s13 = sand.u32 1, %s1016_s20  }
  0x47   : > { %p41_p12 = scmp.eq.s32.totalorder %s38_s10, 0  ;;  %s663_s9 = sshll.u32 %s220_s13, 3 }
  0x48   : > { %s676_s14 = sshll.u32 %s1024_s22, 7  ;;  %s224_s27 = scalar_lea.vmem [#allocation3], %s663_s9 }
  0x49   : > { %s1206_s15 = scalar_select %p41_p12, %s1016_s20, %s43_s11  }
  0x4a   : > { %s1211_s17 = scalar_lea.hbm %s1340_s0, %s676_s14  ;;  %s234_s24 = sshll.u32 %s224_s27, 4  ;;  %s1219_s24 = int_to_ptr.vmem [resolvable:$true] %s234_s24 }
  0x4b   : > { %p1215_p11 = pnand %p789_p4, %p52_p2  ;;  %s221_s6 = scalar_lea.sflag [#allocation4], %s220_s13 }
  0x4c   : > { %s912_s11 = scalar_lea.hbm %s1211_s17, 128  ;;  %s917_s14 = scalar_lea.hbm %s1340_s0, 256 }
  0x4d   : > { %p913_p0 = scmp.ne.s32.totalorder %s1211_s17, %s912_s11  ;;  %p914_p3 = pneg %p1215_p11 }
  0x4e   : > { %p918_p10 = scmp.lt.u32.totalorder %s1211_s17, %s1340_s0  ;;  %p919_p13 = scmp.lt.u32.totalorder %s917_s14, %s912_s11 }
  0x4f   : > { %p915_p5 = pnand %p914_p3, %p913_p0  ;;  %p921_p1 = scmp.lt.u32.totalorder %s912_s11, %s1211_s17 }
  0x50   : > { %p920_p9 = por %p919_p13, %p918_p10 }
  0x51   : > { %p916_p7 = pneg %p915_p5 }
  0x52   : > { %p922_p4 = por %p921_p1, %p920_p9 }
  0x54   : > { %p923_p2 = pnand %p922_p4, %p916_p7 }
  0x56   : > { %926 = shalt.err (!%p923_p2)
}
  0x57   : > { %s927_s13 = scalar_lea.vmem %s1219_s24, 128  ;;  %s1034_s27 = smov [#allocation3]  }
  0x58   : > { %p928_p6 = scmp.ne.s32.totalorder %s1219_s24, %s927_s13  ;;  %s932_s10 = sshll.u32 %s1034_s27, 4  ;;  %s933_s10 = int_to_ptr.vmem [resolvable:$false] %s932_s10 }
  0x59   : > { %s934_s9 = scalar_lea.vmem %s933_s10, 256  ;;  %p935_p5 = scmp.lt.s32.totalorder %s1219_s24, %s933_s10 }
  0x5a   : > { %p930_p12 = pnand %p928_p6, %p914_p3  ;;  %p936_p10 = scmp.lt.s32.totalorder %s934_s9, %s927_s13 }
  0x5c   : > { %p931_p0 = pneg %p930_p12  ;;  %p937_p13 = por %p936_p10, %p935_p5 }
  0x5e   : > { %p938_p9 = pnand %p937_p13, %p931_p0 }
  0x60   : > { %941 = shalt.err (!%p938_p9)
}
  0x61   : > { %782 = dma.hbm_to_vmem [thread:$0]  (!%p1215_p11), %s1211_s17, 128, %s1219_s24, %s221_s6  }
  0x62   : > { %p1359_p7 = scmp.ne.s32.totalorder %s1354_s30, 0 }
  0x63   : > { %s1249_s11 = sand.u32 (!%p1359_p7), 1, %s1012_s19   ;;  %p1360_p3 = scmp.ne.s32.totalorder (!%p1359_p7), %s1352_s28, 0 }
  0x64   : > { %243 = sbr.rel (%p1359_p7) target bundleno = 885 (0x375), region = 40  ;;  %s667_s14 = sshll.u32 (!%p1359_p7), %s1249_s11, 3 }
  0x65   : > { %s246_s16 = scalar_lea.sflag (!%p1359_p7), [#allocation4], %s1249_s11  ;;  %s249_s7 = scalar_lea.vmem (!%p1359_p7), [#allocation3], %s667_s14 }
  0x6b   : > { %995 = dma.done.wait (%p1360_p3), %s246_s16, 128  }
  0x6c   : > { %997 = vsyncadd (%p1360_p3), %s246_s16, 4294967168  ;;  %p1361_p1 = scmp.ne.s32.totalorder %s1350_s26, 0 }
  0x6e   : > { %999 = dma.done.wait (%p1361_p1), [#allocation7], 2112  }
  0x6f   : > { %1001 = vsyncadd (%p1361_p1), [#allocation7], 4294965184  ;;  %vm295_vm0 = vcmask 1043456   ;;  %v290_v0 = vld [vmem:[%s249_s7] sm:$0xff]  ;;  %v1035_v5 = vmov 0   ;;  %v302_v6 = vlaneseq  ;;  %vm288_vm1 = vcmask 24576  }
  0x70   : > { %v293_v1 = vcombine.high %v290_v0, %v290_v0  ;;  %v296_v2 = vsel %vm295_vm0, %v290_v0, 0.0  ;;  %850 = vset.pattern.permute.xlu0 %v1035_v5  ;;  %v1036_v10 = vmov 1966171168   ;;  %v1037_v29 = vmov 0.0   ;;  %v374_v30 = vld [vmem:[#allocation6] sm:$0xf] }
  0x71   : > { %v1263_v7 = vshrl.u32 %v302_v6, 7  ;;  %v1265_v8 = vand.u32 127, %v302_v6  ;;  %v321_v11 = vunpack.c.l.s4 %v1036_v10  ;;  %289 = vst.msk [vmem:[#allocation2] sm:$0x1] %vm288_vm1, %v1037_v29  ;;  %696 = vmatprep.subr.mxu0 %v1037_v29  ;;  %vm1038_vm2 = vmmov 0   ;;  %v454_v31 = vld [vmem:[#allocation8] sm:$0xff] }
  0x72   : > { %v297_v3 = vsel %vm295_vm0, %v293_v1, 0.0  ;;  %697 = vmatpush3.msk.msra.mxu0 %vm295_vm0, %v374_v30  ;;  %698 = vmatprep.mubr.msk.f32.mxu0 %vm1038_vm2, %v1037_v29  ;;  %v455_v32 = vld [vmem:[#allocation8 + $0x8] sm:$0xff]  ;;  %v456_v33 = vld [vmem:[#allocation8 + $0x10] sm:$0xff]  ;;  %v1039_v34 = vmov 0.0|0.0   ;;  %v457_v36 = vld [vmem:[#allocation8 + $0x18] sm:$0xff]  ;;  %vm376_vm3 = vcmask 31744  }
  0x73   : > { %v298_v4 = vadd.f32 %v297_v3, %v296_v2  ;;  %v349_v9 = vsub.s32 %v1265_v8, %v1263_v7  ;;  %v322_v12 = vunpack.c.0.s8 %v321_v11  ;;  %v304_v13 = vsub.s32 0, %v1263_v7  ;;  %733 = vmatprep.mubr.msk.f32.mxu1 %vm1038_vm2, %v1037_v29  ;;  %736 = vmatprep.subr.bf16.mxu1 %v1039_v34  ;;  %v458_v38 = vld [vmem:[#allocation8 + $0x20] sm:$0xff]  ;;  %v459_v39 = vld [vmem:[#allocation8 + $0x28] sm:$0xff]  ;;  %v460_v41 = vld [vmem:[#allocation8 + $0x30] sm:$0xff]  ;;  %s673_s24 = sshll.u32 %s1020_s21, 4  ;;  %s282_s25 = scalar_lea.vmem [#allocation9], %s1249_s11 }
  0x74   : > { %v308_v14 = vsub.s32 1, %v1263_v7  ;;  %v312_v15 = vsub.s32 2, %v1263_v7  ;;  %v316_v16 = vsub.s32 3, %v1263_v7  ;;  %v737_v35 = vpack.c.bf16 %v455_v32, %v454_v31  ;;  %v461_v42 = vld [vmem:[#allocation8 + $0x38] sm:$0xff]  ;;  %v462_v44 = vld [vmem:[#allocation8 + $0x40] sm:$0xff]  ;;  %v463_v45 = vld [vmem:[#allocation8 + $0x48] sm:$0xff]  ;;  %s1291_s10 = scalar_lea.hbm %s1345_s5, %s673_s24 }
  0x75   : > { %299 = vadd.xlane.f32.xlu0 %v298_v4  ;;  %v325_v18 = vsub.s32 %v322_v12, %v1263_v7  ;;  %v740_v37 = vpack.c.bf16 %v457_v36, %v456_v33  ;;  %v743_v40 = vpack.c.bf16 %v459_v39, %v458_v38  ;;  %v746_v43 = vpack.c.bf16 %v461_v42, %v460_v41  ;;  %v464_v47 = vld [vmem:[#allocation8 + $0x50] sm:$0xff]  ;;  %v465_v48 = vld [vmem:[#allocation8 + $0x58] sm:$0xff]  ;;  %v466_v50 = vld [vmem:[#allocation8 + $0x60] sm:$0xff]  ;;  %s561_s6 = sshll.u32 %s282_s25, 4  ;;  %s549_s9 = scalar_lea.sflag [#allocation5], %s1249_s11  ;;  %s1293_s6 = int_to_ptr.vmem [resolvable:$true] %s561_s6 }
  0x76   : > { %738 = vmatpush3.bf16.msra.mxu1 %v737_v35  ;;  %v749_v46 = vpack.c.bf16 %v463_v45, %v462_v44  ;;  %v752_v49 = vpack.c.bf16 %v465_v48, %v464_v47  ;;  %v467_v51 = vld [vmem:[#allocation8 + $0x68] sm:$0xff]  ;;  %v468_v61 = vld [vmem:[#allocation8 + $0x70] sm:$0xff]  ;;  %v469_v62 = vld [vmem:[#allocation8 + $0x78] sm:$0xff]  ;;  %s942_s14 = scalar_lea.vmem %s1293_s6, 16  ;;  %s1040_s21 = smov [#allocation9]  }
  0x77   : > { %739 = vmatprep.subr.bf16.mxu1 %v1039_v34  ;;  %v755_v52 = vpack.c.bf16 %v467_v51, %v466_v50  ;;  %v758_v63 = vpack.c.bf16 %v469_v62, %v468_v61  ;;  %v375_v0 = vld [vmem:[%s1342_s2] sm:$0x1]  ;;  %p943_p11 = scmp.ne.s32.totalorder %s1293_s6, %s942_s14  ;;  %s946_s16 = sshll.u32 %s1040_s21, 4  ;;  %s947_s16 = int_to_ptr.vmem [resolvable:$false] %s946_s16 }
  0x78   : > { %v291_v56 = vld [vmem:[#allocation2] sm:$0x1]  ;;  %s948_s7 = scalar_lea.vmem %s947_s16, 32  ;;  %p949_p6 = scmp.lt.s32.totalorder %s1293_s6, %s947_s16 }
  0x79   : > { %v470_v5 = vld [vmem:[%s1344_s4] sm:$0x1]  ;;  %p944_p4 = pnand %p943_p11, %p1197_p8  ;;  %p950_p12 = scmp.lt.s32.totalorder %s948_s7, %s942_s14 }
  0x7a   : > { %741 = vmatpush3.bf16.msra.mxu1 %v740_v37 }
  0x7b   : > { %742 = vmatprep.subr.bf16.mxu1 %v1039_v34  ;;  %p945_p2 = pneg %p944_p4  ;;  %p951_p0 = por %p950_p12, %p949_p6 }
  0x7d   : > { %p952_p5 = pnand %p951_p0, %p945_p2 }
  0x7e   : > { %744 = vmatpush3.bf16.msra.mxu1 %v743_v40 }
  0x7f   : > { %745 = vmatprep.subr.bf16.mxu1 %v1039_v34 }
  0x82   : > { %747 = vmatpush3.bf16.msra.mxu1 %v746_v43 }
  0x83   : > { %748 = vmatprep.subr.bf16.mxu1 %v1039_v34 }
  0x86   : > { %750 = vmatpush3.bf16.msra.mxu1 %v749_v46 }
  0x87   : > { %751 = vmatprep.subr.bf16.mxu1 %v1039_v34 }
  0x8a   : > { %753 = vmatpush3.bf16.msra.mxu1 %v752_v49 }
  0x8b   : > { %754 = vmatprep.subr.bf16.mxu1 %v1039_v34 }
  0x8e   : > { %756 = vmatpush3.bf16.msra.mxu1 %v755_v52 }
  0x8f   : > { %757 = vmatprep.subr.bf16.mxu1 %v1039_v34 }
  0x92   : > { %759 = vmatpush3.bf16.msra.mxu1 %v758_v63 }
 0x102   : > { %v300_v17 = vpop.xlane.xlu0 %299 }
 0x103   : > { %v305_v19 = vrot.slane %v300_v17, %v304_v13  ;;  %v309_v20 = vrot.slane %v300_v17, %v308_v14  ;;  %v313_v21 = vrot.slane %v300_v17, %v312_v15  ;;  %v317_v22 = vrot.slane %v300_v17, %v316_v16 }
 0x105   : > { %v318_v23 = vcombine.low %v305_v19, %v309_v20  ;;  %v319_v24 = vcombine.low %v313_v21, %v317_v22 }
 0x107   : > { %v326_v25 = vrot.slane %v318_v23, %v325_v18  ;;  %v333_v26 = vrot.slane %v319_v24, %v325_v18 }
 0x109   : > { %v334_v27 = vcombine.low %v326_v25, %v333_v26 }
 0x10b   : > { %v341_v28 = vrot.slane %v334_v27, %v325_v18 }
 0x10d   : > { %343 = vperm.xlu0 %850, %v341_v28  }
 0x18c   : > { %v344_v53 = vpop.permute.xlu0 %343 }
 0x18d   : > { %v350_v54 = vrot.slane %v344_v53, %v349_v9 }
 0x18f   : > { %v357_v55 = vrot.slane %v350_v54, %v325_v18 }
 0x191   : > { %v364_v57 = vrot.slane %v357_v55, %v325_v18 }
 0x193   : > { %v366_v58 = vadd.f32 %v364_v57, %v291_v56 }
 0x195   : > { %368 = vst.msk [vmem:[#allocation2] sm:$0x1] %vm288_vm1, %v366_v58 }
 0x19c   : > { %v372_v59 = vld [vmem:[#allocation2] sm:$0x1] }
 0x19d   : > { %v373_v60 = vmul.f32 0.00390625, %v372_v59 }
 0x19f   : > { %699 = vmatmul.mubr.msk.f32.vlgmr.msra.gmra.mrb[0].mxu0 %vm376_vm3, %v373_v60 }
 0x272   : > { %v449_v1 = vpop.f32.mrb[0].mxu0 }
 0x273   : > { %v450_v2 = vadd.f32 %v449_v1, %v375_v0  ;;  %v700_v3 = vpop.f32.mrb[1].mxu0 }
 0x275   : > { %v453_v4 = vmax.f32 %v450_v2, 0.0 }
 0x277   : > { %734 = vmatmul.mubr.f32.vlgmr.msra.gmra.mrb[0].mxu1 %v453_v4 }
 0x34a   : > { %v537_v6 = vpop.f32.mrb[0].mxu1 }
 0x34b   : > { %v538_v7 = vadd.f32 %v537_v6, %v470_v5  ;;  %v735_v8 = vpop.f32.mrb[1].mxu1 }
 0x34d   : > { %v672_v9 = vmul.f32 -1.442695, %v538_v7 }
 0x34f   : > { %852 = vpow2.f32 %v672_v9 }
 0x359   : > { %v853_v10 = vpop.eup %852 }
 0x35a   : > { %v544_v11 = vadd.f32 1.0, %v853_v10 }
 0x35c   : > { %854 = vrcp.f32 %v544_v11 }
 0x366   : > { %v855_v12 = vpop.eup %854 }
 0x367   : > { %547 = vst [vmem:[%s282_s25] sm:$0x1] %v855_v12 }
 0x368   : > { %955 = shalt.err (!%p952_p5)
}
 0x369   : > { %s956_s11 = scalar_lea.hbm %s1291_s10, 16  ;;  %s960_s30 = scalar_lea.hbm %s1345_s5, 32 }
 0x36a   : > { %p957_p10 = scmp.ne.s32.totalorder %s1291_s10, %s956_s11  ;;  %p961_p7 = scmp.lt.u32.totalorder %s1291_s10, %s1345_s5 }
 0x36b   : > { %p962_p3 = scmp.lt.u32.totalorder %s960_s30, %s956_s11  ;;  %p964_p11 = scmp.lt.u32.totalorder %s956_s11, %s1291_s10 }
 0x36c   : > { %p958_p13 = pnand %p957_p10, %p1197_p8 }
 0x36d   : > { %p963_p1 = por %p962_p3, %p961_p7 }
 0x36e   : > { %p959_p9 = pneg %p958_p13 }
 0x36f   : > { %p965_p4 = por %p964_p11, %p963_p1 }
 0x371   : > { %p966_p2 = pnand %p965_p4, %p959_p9 }
 0x373   : > { %969 = shalt.err (!%p966_p2)
}
 0x374   : > { %770 = dma.vmem_to_hbm [thread:$0]  (%p1197_p8), %s1293_s6, 16, %s1291_s10, %s549_s9  }
 0x375 PF: > { %s573_s25 = sand.u32 1, %s1008_s18   ;;  %p1362_p6 = scmp.ne.s32.totalorder %s1353_s29, 0 }
 0x376   : > { %p1363_p12 = scmp.ge.s32.totalorder %s1028_s23, 2  ;;  %s574_s13 = scalar_lea.sflag [#allocation5], %s573_s25 }
 0x378   : > { %p784_p0 = pnand %p1363_p12, %p1362_p6 }
 0x37a   : > { %1003 = dma.done.wait (!%p784_p0), %s574_s13, 16  }
 0x37b   : > { %1005 = vsyncadd (!%p784_p0), %s574_s13, 4294967280  ;;  %s22_s23 = sadd.s32 1, %s1028_s23   ;;  %s1364_s18 = smov %s1012_s19 }
 0x37c   : > { %p19_p5 = scmp.ge.s32.totalorder %s22_s23, 4   ;;  %s1365_s19 = smov %s1016_s20 }
 0x37d   : > { %s1366_s20 = smov %s1206_s15  ;;  %s1367_s21 = smov %s1024_s22 }
 0x37e   : > { %s1368_s22 = smov %s1370_s8  ;;  %21 = sbr.rel (!%p19_p5) target bundleno = 7 (0x7), region = 101 }
 0x385   :  { %578 = vsyncpa [#allocation4], 1 }
 0x386   :  { %580 = vsyncpa [#allocation4 + $0x1], 1 }
 0x387   :  { %581 = vsyncpa [#allocation7], 1 }
 0x388   :  { %582 = vsyncpa [#allocation5], 1 }
 0x389   :  { %584 = vsyncpa [#allocation5 + $0x1], 1 }

</bundles_post_ra>
